<compile_context>
chip_gen: v5e
topology: v5e:2x2
jax: 0.10.0
libtpu: 0.0.40
codegen_flags: <defaults>
</compile_context>

<pallas_src>
import functools

import jax
import jax.numpy as jnp
from jax import lax
from jax.experimental import pallas as pl
from jax.experimental.pallas import tpu as pltpu

_LANES = 128
_SUBLANES = 8
_PAD_GRANULE = _SUBLANES * _LANES          # 1024 elements: minimal pad granularity
_MIB = 1024 * 1024


def _device_kind() -> str:
    try:
        return jax.devices()[0].device_kind.lower()
    except Exception:
        return ""


def _num_tensorcores_per_chip() -> int:
    # v7x exposes two TensorCores per chip; v5e/v6e have one, so the 2-way split
    # axis (pure overhead on single-core parts) is only enabled on v7x.
    # TODO(synk): verify on v7x that "parallel" really core-shards this axis; if a
    # profile shows one TC doing all steps, switch it to pltpu.CORE_PARALLEL.
    kind = _device_kind()
    if "v7" in kind:
        return 2
    return 1


def _tile_bytes_budget() -> int:
    # ~0.35 us per grid step of pipeline overhead -> target 4-8 MiB input tiles.
    # v5e has the lowest HBM BW and the smallest scoped-VMEM default, use 4 MiB.
    kind = _device_kind()
    if "v5 lite" in kind or "v5e" in kind or "v5litepod" in kind:
        return 4 * _MIB
    return 8 * _MIB


def _log_sum_kernel(x_ref, o_ref, *, rows_total, block_rows, blocks_per_split,
                    acc_rows, mask_possible):
    c = pl.program_id(0)   # TensorCore split axis ("parallel"; size 1 on v5e/v6e)
    b = pl.program_id(1)   # sequential reduction axis ("arbitrary")

    @pl.when(b == 0)
    def _():
        o_ref[...] = jnp.zeros_like(o_ref)

    logs = jnp.log(x_ref[...].astype(jnp.float32))

    def _accumulate(vals):
        # (block_rows, 128) -> (block_rows/acc_rows, acc_rows, 128) is a tile-aligned
        # (free) reshape; summing the major axis gives acc_rows/8 independent vreg
        # accumulation chains instead of one long serial vadd chain.
        o_ref[...] += vals.reshape(-1, acc_rows, _LANES).sum(axis=0)[None]

    if not mask_possible:
        _accumulate(logs)
    else:
        # Only the block(s) that actually overhang the real slab (partial last block
        # or clamped extra grid cells) pay for the iota + compare + select.
        row0 = (c * blocks_per_split + b) * block_rows
        is_edge = row0 + block_rows > rows_total

        @pl.when(jnp.logical_not(is_edge))
        def _():
            _accumulate(logs)

        @pl.when(is_edge)
        def _():
            row_ids = row0 + lax.broadcasted_iota(jnp.int32, logs.shape, 0)
            # jnp.where is a select: NaN/-inf from log() of undefined/garbage rows
            # cannot leak into the sum.
            _accumulate(jnp.where(row_ids < rows_total, logs, jnp.float32(0.0)))


def log_loss(x: jax.Array, negation: bool = True, *,
             block_rows_cap: int | None = None) -> jax.Array:
    """Pallas equivalent of Log_loss.forward(x, negation). Returns a scalar (f32)."""
    if x.dtype not in (jnp.float32, jnp.bfloat16):
        x = x.astype(jnp.float32)

    flat = x.reshape(-1)                     # free (bitcast) for row-major inputs
    n = flat.shape[0]
    if n == 0:
        zero = jnp.float32(0.0)
        return -zero if negation else zero

    itemsize = flat.dtype.itemsize

    # Pad (with 1.0 -> log == 0) only when needed.  Aligned sizes take the zero-copy
    # path; unaligned ones additionally allow XLA to fuse the pad into the custom
    # call so the padded array need not be re-materialized in HBM.
    pad = (-n) % _PAD_GRANULE
    if pad:
        flat = jnp.pad(flat, (0, pad), constant_values=1)
    rows = flat.shape[0] // _LANES           # always a multiple of 8
    slab = flat.reshape(rows, _LANES)

    # Bytes-budgeted, generation-aware tile (bf16 automatically gets 2x the rows).
    cap = _tile_bytes_budget() // (_LANES * itemsize)
    cap = max(32, (cap // 32) * 32)
    if block_rows_cap is not None:           # small override, used by the tests below
        cap = max(_SUBLANES, (block_rows_cap // _SUBLANES) * _SUBLANES)
    block_rows = min(rows, cap)              # multiple of 8 (rows and cap both are)
    num_blocks = pl.cdiv(rows, block_rows)

    # Widest accumulator height in {32, 16, 8} that divides the block.
    acc_rows = next(a for a in (32, 16, 8) if block_rows % a == 0)

    # Split the reduction across TensorCores only where there is more than one.
    n_split = 2 if (_num_tensorcores_per_chip() >= 2 and num_blocks >= 2) else 1
    blocks_per_split = pl.cdiv(num_blocks, n_split)
    has_extra_cells = n_split * blocks_per_split > num_blocks
    mask_possible = bool(has_extra_cells or num_blocks * block_rows > rows)

    if has_extra_cells:
        def x_index_map(c, b):
            # Clamp so the (rare) extra grid cells map to a real block; they are
            # fully masked out in-kernel.
            return (jnp.minimum(c * blocks_per_split + b, num_blocks - 1), 0)
    else:
        def x_index_map(c, b):
            return (c * blocks_per_split + b, 0)

    kernel = functools.partial(
        _log_sum_kernel,
        rows_total=rows,
        block_rows=block_rows,
        blocks_per_split=blocks_per_split,
        acc_rows=acc_rows,
        mask_possible=mask_possible,
    )

    in_block_bytes = block_rows * _LANES * itemsize
    out_bytes = n_split * acc_rows * _LANES * 4
    # Double-buffered input + resident output + generous headroom; stays well under
    # v7x's 64 MiB physical VMEM and raises v5e's 16 MiB scoped default when needed.
    vmem_limit = int(min(48 * _MIB, 2 * in_block_bytes + out_bytes + 8 * _MIB))

    compiler_params = pltpu.CompilerParams(
        dimension_semantics=("parallel", "arbitrary"),
        vmem_limit_bytes=vmem_limit,
        allow_input_fusion=[True] if pad else None,
    )

    cost = pl.CostEstimate(
        flops=int(n),                        # accumulation adds
        transcendentals=int(n),              # one log per element
        bytes_accessed=int(n * itemsize + out_bytes),
    )

    partials = pl.pallas_call(
        kernel,
        out_shape=jax.ShapeDtypeStruct((n_split, acc_rows, _LANES), jnp.float32),
        grid_spec=pltpu.PrefetchScalarGridSpec(
            num_scalar_prefetch=0,
            grid=(n_split, blocks_per_split),
            in_specs=[pl.BlockSpec((block_rows, _LANES), x_index_map)],
            out_specs=pl.BlockSpec((1, acc_rows, _LANES), lambda c, b: (c, 0, 0)),
        ),
        compiler_params=compiler_params,
        cost_estimate=cost,
    )(slab)

    total = jnp.sum(partials)   # single small cross-lane reduce, once, in the wrapper
    return -total if negation else total


if __name__ == "__main__":
    key = jax.random.PRNGKey(0)
    k1, k2, k3 = jax.random.split(key, 3)

    # Small NCHW input (strictly positive so log() is finite); 1024-aligned size
    # -> zero-copy (no pad) path, single block, no masking.
    x = jax.random.uniform(k1, (2, 4, 16, 16), dtype=jnp.float32,
                           minval=0.1, maxval=2.0)
    loss_neg = jax.block_until_ready(log_loss(x, negation=True))
    loss_pos = jax.block_until_ready(log_loss(x, negation=False))
    ref = jnp.sum(jnp.log(x))
    assert jnp.allclose(loss_neg, -ref, rtol=1e-5, atol=1e-5), (loss_neg, -ref)
    assert jnp.allclose(loss_pos, ref, rtol=1e-5, atol=1e-5), (loss_pos, ref)

    # Unaligned size with a tiny tile cap -> exercises the (fusable) pad path and a
    # multi-block reduction grid.
    x2 = jax.random.uniform(k2, (4, 5, 125), dtype=jnp.float32,
                            minval=0.05, maxval=3.0)
    loss2 = jax.block_until_ready(log_loss(x2, negation=True, block_rows_cap=8))
    ref2 = -jnp.sum(jnp.log(x2))
    assert jnp.allclose(loss2, ref2, rtol=1e-5, atol=1e-5), (loss2, ref2)

    # Aligned size whose row count is not a multiple of the tile -> exercises the
    # pl.when-gated edge-block masking (and the clamped split path on 2-TC parts).
    x3 = jax.random.uniform(k3, (5, 8, 128), dtype=jnp.float32,
                            minval=0.1, maxval=4.0)
    loss3 = jax.block_until_ready(log_loss(x3, negation=True, block_rows_cap=32))
    ref3 = -jnp.sum(jnp.log(x3))
    assert jnp.allclose(loss3, ref3, rtol=1e-5, atol=1e-5), (loss3, ref3)

    print("KERNEL_OK")
</pallas_src>

<mosaic_0001>
module attributes {stable_mosaic.version = 11 : i64} {
  func.func @_log_sum_kernel(%arg0: i32, %arg1: i32, %arg2: memref<16x128xf32, #tpu.memory_space<vmem>>, %arg3: memref<1x16x128xf32, #tpu.memory_space<vmem>>) attributes {dimension_semantics = [#tpu.dimension_semantics<parallel>, #tpu.dimension_semantics<arbitrary>], iteration_bounds = array<i64: 1, 1>, scalar_prefetch = 0 : i64, scratch_operands = 0 : i64, tpu.core_type = #tpu.core_type<tc>, window_params = [{transform_indices = @transform_0, window_bounds = array<i64: 16, 128>}, {transform_indices = @transform_1, window_bounds = array<i64: 1, 16, 128>}]} {
    %c0_i32 = arith.constant 0 : i32
    %0 = arith.cmpi eq, %arg1, %c0_i32 : i32
    %1 = arith.extui %0 : i1 to i32
    %c0_i32_0 = arith.constant 0 : i32
    %2 = arith.cmpi ne, %1, %c0_i32_0 : i32
    scf.if %2 {
      %cst_8 = arith.constant 0.000000e+00 : f32
      %11 = vector.broadcast %cst_8 : f32 to vector<1x16x128xf32>
      %c0_9 = arith.constant 0 : index
      %c0_10 = arith.constant 0 : index
      %c0_11 = arith.constant 0 : index
      %12 = vector.load %arg3[%c0_9, %c0_10, %c0_11] : memref<1x16x128xf32, #tpu.memory_space<vmem>>, vector<1x16x128xf32>
      tpu.vector_store %arg3[%c0_9, %c0_10, %c0_11], %11 {strides = array<i32>} : memref<1x16x128xf32, #tpu.memory_space<vmem>>, vector<1x16x128xf32>,
    } else {
    }
    %c0 = arith.constant 0 : index
    %c0_1 = arith.constant 0 : index
    %3 = vector.load %arg2[%c0, %c0_1] : memref<16x128xf32, #tpu.memory_space<vmem>>, vector<16x128xf32>
    %4 = math.log %3 : vector<16x128xf32>
    %c0_2 = arith.constant 0 : index
    %c0_3 = arith.constant 0 : index
    %c0_4 = arith.constant 0 : index
    %5 = vector.load %arg3[%c0_2, %c0_3, %c0_4] : memref<1x16x128xf32, #tpu.memory_space<vmem>>, vector<1x16x128xf32>
    %6 = vector.shape_cast %4 : vector<16x128xf32> to vector<1x16x128xf32>
    %cst = arith.constant dense<0.000000e+00> : vector<16x128xf32>
    %7 = vector.multi_reduction <add>, %6, %cst [0] : vector<1x16x128xf32> to vector<16x128xf32>
    %8 = vector.shape_cast %7 : vector<16x128xf32> to vector<1x16x128xf32>
    %9 = arith.addf %5, %8 : vector<1x16x128xf32>
    %c0_5 = arith.constant 0 : index
    %c0_6 = arith.constant 0 : index
    %c0_7 = arith.constant 0 : index
    %10 = vector.load %arg3[%c0_5, %c0_6, %c0_7] : memref<1x16x128xf32, #tpu.memory_space<vmem>>, vector<1x16x128xf32>
    tpu.vector_store %arg3[%c0_5, %c0_6, %c0_7], %9 {strides = array<i32>} : memref<1x16x128xf32, #tpu.memory_space<vmem>>, vector<1x16x128xf32>,
    return
  }
  func.func @transform_0(%arg0: i32, %arg1: i32) -> (i32, i32) {
    %c1_i32 = arith.constant 1 : i32
    %0 = arith.muli %arg0, %c1_i32 : i32
    %1 = arith.addi %0, %arg1 : i32
    %c0_i32 = arith.constant 0 : i32
    %c0_i32_0 = arith.constant 0 : i32
    return %1, %c0_i32 : i32, i32
  }
  func.func @transform_1(%arg0: i32, %arg1: i32) -> (i32, i32, i32) {
    %c0_i32 = arith.constant 0 : i32
    %c0_i32_0 = arith.constant 0 : i32
    %c0_i32_1 = arith.constant 0 : i32
    return %arg0, %c0_i32, %c0_i32_0 : i32, i32, i32
  }
}

</mosaic_0001>

<bundles_post_ra>
// kernel: tpu_custom_call.1
= control target key start
LH: loop header
LB: loop body
LE: loop exit
PB: predicated region body
PF: predicated region fallthrough
CT: control target
= control target key end

     0   :  { %6 = vsyncpa [#allocation3], 0  ;;  %s151_s0 = inlined_call_operand.hbm [shape: f32[16,128], index: 0, kind: input, shape index: {}]   ;;  %s152_s1 = inlined_call_operand.hbm [shape: f32[1,16,128], index: 1, kind: output, shape index: {}]  }
   0x1   :  { %7 = vsyncpa [#allocation4], 0  ;;  %s16_s8 = sshll.u32 %s151_s0, 4  ;;  %s131_s9 = smov [#allocation2]   ;;  %s17_s8 = int_to_ptr.hbm [resolvable:$true] %s16_s8 }
   0x2   :  { %s18_s10 = sshll.u32 %s131_s9, 4  ;;  %s132_s11 = smov 128   ;;  %s19_s10 = int_to_ptr.vmem [resolvable:$true] %s18_s10 }
   0x3   :  { %s133_s12 = smov 8  }
   0x4   :  { %24 = dma.hbm_to_vmem [thread:$0]  %s17_s8, 256, %s19_s10, [#allocation3], %s132_s11, %s132_s11, %s133_s12  }
   0x5   :  { %127 = dma.done.wait [#allocation3], 256  }
   0x6   :  { %128 = vsyncadd [#allocation3], 4294967040  ;;  %v37_v0 = vld [vmem:[#allocation2] sm:$0xff]  ;;  %v38_v1 = vld [vmem:[#allocation2 + $0x8] sm:$0xff]  ;;  %s134_s13 = smov [#allocation5]   ;;  %s57_s16 = sshll.u32 %s152_s1, 4  ;;  %s58_s16 = int_to_ptr.hbm [resolvable:$true] %s57_s16 }
   0x7   :  { %75 = vlog2.f32 %v37_v0  ;;  %s55_s14 = sshll.u32 %s134_s13, 4  ;;  %s56_s14 = int_to_ptr.vmem [resolvable:$true] %s55_s14 }
   0x8   :  { %77 = vlog2.f32 %v38_v1 }
   0xd   :  { %v76_v2 = vpop.eup %75 }
   0xe   :  { %v78_v3 = vpop.eup %77  ;;  %v40_v4 = vmul.f32 0.6931472, %v76_v2 }
   0xf   :  { %v42_v5 = vmul.f32 0.6931472, %v78_v3 }
  0x10   :  { %49 = vst [vmem:[#allocation5] sm:$0xff] %v40_v4 }
  0x11   :  { %50 = vst [vmem:[#allocation5 + $0x8] sm:$0xff] %v42_v5 }
  0x12   :  { %63 = dma.vmem_to_hbm [thread:$0]  %s56_s14, 256, %s58_s16, [#allocation4], %s132_s11, %s132_s11, %s133_s12  }
  0x13   :  { %129 = dma.done.wait [#allocation4], 256  }
  0x14   :  { %130 = vsyncadd [#allocation4], 4294967040 }
  0x15   :  { %68 = vsyncpa [#allocation3], 1 }
  0x16   :  { %69 = vsyncpa [#allocation4], 1 }

</bundles_post_ra>
